<compile_context>
chip_gen: v7x
topology: tpu7x:2x2x1
jax: 0.10.0
libtpu: 0.0.40
codegen_flags: <defaults>
</compile_context>

<pallas_src>
import functools
import math

import jax
import jax.numpy as jnp
from jax.experimental import pallas as pl
from jax.experimental.pallas import tpu as pltpu

LEAKY_SLOPE = 0.1
BN_EPS = 1e-5
VMEM_LIMIT_BYTES = 32 * 1024 * 1024


def _default_tiles():
    """Bigger L tiles on 128 MiB VMEM parts (v5e/v6e), smaller on v7x (64 MiB)."""
    vmem = 128 * 1024 * 1024
    try:
        info = pltpu.get_tpu_info()
        vmem = int(getattr(info, "vmem_capacity_bytes", vmem))
    except Exception:
        pass
    if vmem <= 64 * 1024 * 1024:
        return 4096, 1024
    return 8192, 2048


CONV_MAX_TILE, UPS_MAX_IN_TILE = _default_tiles()


def _leaky(x, slope):
    return jnp.where(x >= 0, x, slope * x)


def _round_up(n, m):
    return ((n + m - 1) // m) * m


def _pick_tile(length, max_tile):
    return int(min(max_tile, _round_up(max(int(length), 1), 128)))


def _cparams():
    return pltpu.CompilerParams(
        dimension_semantics=("parallel", "parallel"),
        vmem_limit_bytes=VMEM_LIMIT_BYTES)


# --------------------------------------------------------------------------- #
# Kernel bodies
# --------------------------------------------------------------------------- #

def _masked_cat(xl_ref, xc_ref, xr_ref, l, Lt, L):
    """Assemble [C, Lt + 256] window (left 128-halo | center Lt | right 128-halo),
    in bf16, with everything outside the true signal [0, L) zeroed.
    Column c of the result corresponds to global position l*Lt - 128 + c."""
    Lw = Lt + 256
    cat = jnp.concatenate([xl_ref[...], xc_ref[...], xr_ref[...]], axis=-1)
    g = jax.lax.broadcasted_iota(jnp.int32, (1, Lw), 1) + (l * Lt - 128)
    return jnp.where(jnp.logical_and(g >= 0, g < L), cat, 0.0)


def _conv_tiled_kernel(xl_ref, xc_ref, xr_ref, w_ref, b_ref, o_ref, *,
                       K, d, pad, Lt, L_in):
    """Plain Conv1d (zero padding `pad`, dilation `d`) on one L tile."""
    l = pl.program_id(0)
    cat = _masked_cat(xl_ref, xc_ref, xr_ref, l, Lt, L_in)          # bf16 [C, Lt+256]
    base = 128 - pad
    # im2col: taps folded into the contraction dim -> one bf16 matmul, f32 acc.
    cols = jnp.concatenate(
        [cat[:, base + k * d: base + k * d + Lt] for k in range(K)], axis=0)
    acc = jnp.dot(w_ref[...], cols, preferred_element_type=jnp.float32) + b_ref[...]
    o_ref[...] = acc.astype(o_ref.dtype)


def _fused_conv_pair(cat, w1, b1, w2, b2, *, K, d, Lt, L, l, slope):
    """leaky -> conv(K,d,'same') -> leaky -> conv(K,d,'same') on one masked
    window `cat` ([C, Lt+256] bf16, column 128 == global l*Lt).  Returns the
    center [C_out2, Lt] result in f32."""
    H = d * (K - 1)
    p = H // 2
    Lf = Lt + H
    h = _leaky(cat, slope)                       # leaky(0) == 0 keeps zero-padding exact
    base1 = 128 - 2 * p
    cols1 = jnp.concatenate(
        [h[:, base1 + k * d: base1 + k * d + Lf] for k in range(K)], axis=0)
    f1 = jnp.dot(w1, cols1, preferred_element_type=jnp.float32) + b1
    gf = jax.lax.broadcasted_iota(jnp.int32, (1, Lf), 1) + (l * Lt - p)
    f1 = jnp.where(jnp.logical_and(gf >= 0, gf < L), f1, 0.0)   # conv2 zero padding
    h1 = _leaky(f1, slope).astype(cat.dtype)                     # downcast before dot
    cols2 = jnp.concatenate([h1[:, k * d: k * d + Lt] for k in range(K)], axis=0)
    return jnp.dot(w2, cols2, preferred_element_type=jnp.float32) + b2


def _resblock_kernel(xl_ref, xc_ref, xr_ref, w1_ref, b1_ref, w2_ref, b2_ref,
                     wg_ref, bg_ref, o_ref, *, K, d, Lt, L, slope):
    """Fused VocoderResidualBlock:
       out = x + sigmoid(Wg@x + bg) * conv2(leaky(conv1(leaky(x))))."""
    l = pl.program_id(0)
    cat = _masked_cat(xl_ref, xc_ref, xr_ref, l, Lt, L)
    x_res = cat[:, 128:128 + Lt]                                  # bf16 residual (aligned slice)
    f2 = _fused_conv_pair(cat, w1_ref[...], b1_ref[...], w2_ref[...], b2_ref[...],
                          K=K, d=d, Lt=Lt, L=L, l=l, slope=slope)
    g = jnp.dot(wg_ref[...], x_res, preferred_element_type=jnp.float32) + bg_ref[...]
    # sigmoid via EUP: exp + approx reciprocal (review item 9).
    gate = pl.reciprocal(1.0 + jnp.exp(-g), approx=True)
    o_ref[...] = (x_res.astype(jnp.float32) + gate * f2).astype(o_ref.dtype)


def _final_kernel(xl_ref, xc_ref, xr_ref, w1_ref, b1_ref, w2_ref, b2_ref, o_ref,
                  *, K, Lt, L, slope):
    """Fused final head: leaky -> conv(C,C,3,p=1) -> leaky -> conv(C,1,3,p=1) -> tanh."""
    l = pl.program_id(0)
    cat = _masked_cat(xl_ref, xc_ref, xr_ref, l, Lt, L)
    f2 = _fused_conv_pair(cat, w1_ref[...], b1_ref[...], w2_ref[...], b2_ref[...],
                          K=K, d=1, Lt=Lt, L=L, l=l, slope=slope)
    o_ref[...] = jnp.tanh(f2).astype(o_ref.dtype)


def _upsample_poly_kernel(*refs, s, C_out, Lm, L_in, has_pre, slope):
    """Polyphase ConvTranspose1d (kernel_size == stride, padding == 0) with the
    previous stage's BatchNorm scale/shift + LeakyReLU optionally folded in.
    Emits phase-major output [s, C_out, Lm] plus per-channel (sum, sumsq)."""
    if has_pre:
        x_ref, w_ref, b_ref, sc_ref, sh_ref, o_ref, st_ref = refs
    else:
        x_ref, w_ref, b_ref, o_ref, st_ref = refs
    l = pl.program_id(0)
    valid = (jax.lax.broadcasted_iota(jnp.int32, (1, Lm), 1) + l * Lm) < L_in
    x = jnp.where(valid, x_ref[...], 0.0)                         # bf16
    if has_pre:
        xf = x.astype(jnp.float32) * sc_ref[...] + sh_ref[...]
        x = _leaky(xf, slope).astype(jnp.bfloat16)                # downcast before dot
    # One stacked bf16 matmul: rows (k, c_out), contraction over C_in.
    P = jnp.dot(w_ref[...], x, preferred_element_type=jnp.float32)
    bias = b_ref[...]
    ch_sum = jnp.zeros((C_out, 1), jnp.float32)
    ch_sq = jnp.zeros((C_out, 1), jnp.float32)
    for k in range(s):                      # static unroll over phases
        pk = P[k * C_out:(k + 1) * C_out, :] + bias
        pkm = jnp.where(valid, pk, 0.0)     # exclude padded columns from stats
        ch_sum = ch_sum + jnp.sum(pkm, axis=1, keepdims=True)
        ch_sq = ch_sq + jnp.sum(pkm * pkm, axis=1, keepdims=True)
        o_ref[k, :, :] = pk.astype(o_ref.dtype)
    st_ref[...] = jnp.concatenate([ch_sum, ch_sq], axis=1)


def _bn_act_cond_kernel(*refs, has_pre, has_cond, slope):
    """x = leaky(scale*y + shift)  [+ 1x1 conv(condition)]  -- one pass."""
    i = 0
    y_ref = refs[i]; i += 1
    if has_pre:
        sc_ref, sh_ref = refs[i], refs[i + 1]; i += 2
    if has_cond:
        c_ref, wc_ref, bc_ref = refs[i], refs[i + 1], refs[i + 2]; i += 3
    o_ref = refs[i]
    x = y_ref[...].astype(jnp.float32)
    if has_pre:
        x = _leaky(x * sc_ref[...] + sh_ref[...], slope)
    if has_cond:
        x = x + jnp.dot(wc_ref[...], c_ref[...],
                        preferred_element_type=jnp.float32) + bc_ref[...]
    o_ref[...] = x.astype(o_ref.dtype)


# --------------------------------------------------------------------------- #
# pallas_call wrappers
# --------------------------------------------------------------------------- #

def _halo_specs(C, Lt, L_in):
    """Center (C, Lt) block plus two narrow (C, 128) neighbour blocks (thin
    halos).  Block indices are clamped; the kernel masks by global position."""
    nb = Lt // 128
    NB = max(pl.cdiv(L_in, 128), 1)          # 128-blocks in the input
    n_ct = max(pl.cdiv(L_in, Lt), 1)         # Lt-blocks in the input
    left = pl.BlockSpec((None, C, 128),
                        lambda l, b: (b, 0, jnp.maximum(l * nb - 1, 0)))
    center = pl.BlockSpec((None, C, Lt),
                          lambda l, b: (b, 0, jnp.minimum(l, n_ct - 1)))
    right = pl.BlockSpec((None, C, 128),
                         lambda l, b: (b, 0, jnp.minimum((l + 1) * nb, NB - 1)))
    return [left, center, right]


def conv1d_tiled(x, w, b, *, dilation=1, padding=0, out_dtype=None,
                 max_tile=CONV_MAX_TILE):
    """Conv1d on [B, C_in, L] with weight [C_out, C_in, K]; L-tiled, halo via
    thin clamped neighbour blocks + in-kernel masking."""
    B, C_in, L_in = x.shape
    C_out, _, K = w.shape
    d = dilation
    L_out = L_in + 2 * padding - d * (K - 1)
    Lt = _pick_tile(L_out, max_tile)
    assert padding <= 128 and d * (K - 1) <= 128
    n_out = pl.cdiv(L_out, Lt)
    w2 = jnp.transpose(w, (0, 2, 1)).reshape(C_out, K * C_in).astype(jnp.bfloat16)
    b2 = b.reshape(C_out, 1).astype(jnp.float32)
    if out_dtype is None:
        out_dtype = x.dtype
    kernel = functools.partial(_conv_tiled_kernel, K=K, d=d, pad=padding,
                               Lt=Lt, L_in=L_in)
    return pl.pallas_call(
        kernel,
        out_shape=jax.ShapeDtypeStruct((B, C_out, L_out), out_dtype),
        grid=(n_out, B),
        in_specs=_halo_specs(C_in, Lt, L_in) + [
            pl.BlockSpec((C_out, K * C_in), lambda l, b: (0, 0)),
            pl.BlockSpec((C_out, 1), lambda l, b: (0, 0)),
        ],
        out_specs=pl.BlockSpec((None, C_out, Lt), lambda l, b: (b, 0, l)),
        compiler_params=_cparams(),
    )(x, x, x, w2, b2)


def upsample_poly(x, w_t, b, *, stride, pre_scale=None, pre_shift=None,
                  out_dtype, max_in_tile=UPS_MAX_IN_TILE, slope=LEAKY_SLOPE):
    """Polyphase ConvTranspose1d (torch weight [C_in, C_out, K], K == stride,
    padding == 0).  Returns (y [B, C_out, stride*L_in],
    stats [B, n_tiles, C_out, 2], per-tile element counts [n_tiles])."""
    B, C_in, L_in = x.shape
    _, C_out, K = w_t.shape
    s = stride
    assert K == s
    Lm = _pick_tile(L_in, max_in_tile)
    n_m = pl.cdiv(L_in, Lm)
    L_out = s * L_in
    w_stack = (jnp.transpose(w_t, (2, 1, 0))
               .reshape(s * C_out, C_in).astype(jnp.bfloat16))     # rows (k, co)
    b2 = b.reshape(C_out, 1).astype(jnp.float32)
    has_pre = pre_scale is not None
    kernel = functools.partial(_upsample_poly_kernel, s=s, C_out=C_out, Lm=Lm,
                               L_in=L_in, has_pre=has_pre, slope=slope)
    in_specs = [pl.BlockSpec((None, C_in, Lm), lambda l, b: (b, 0, l)),
                pl.BlockSpec((s * C_out, C_in), lambda l, b: (0, 0)),
                pl.BlockSpec((C_out, 1), lambda l, b: (0, 0))]
    args = [x, w_stack, b2]
    if has_pre:
        in_specs += [pl.BlockSpec((C_in, 1), lambda l, b: (0, 0)),
                     pl.BlockSpec((C_in, 1), lambda l, b: (0, 0))]
        args += [pre_scale.reshape(C_in, 1).astype(jnp.float32),
                 pre_shift.reshape(C_in, 1).astype(jnp.float32)]
    y_ph, stats = pl.pallas_call(
        kernel,
        out_shape=(jax.ShapeDtypeStruct((B, s, C_out, L_in), out_dtype),
                   jax.ShapeDtypeStruct((B, n_m, C_out, 2), jnp.float32)),
        grid=(n_m, B),
        in_specs=in_specs,
        out_specs=(pl.BlockSpec((None, s, C_out, Lm), lambda l, b: (b, 0, 0, l)),
                   pl.BlockSpec((None, None, C_out, 2), lambda l, b: (b, l, 0, 0))),
        compiler_params=_cparams(),
    )(*args)
    # TODO(synk): phase interleave kept as an XLA transpose; in-kernel lane
    # interleave (strided lane store / minor-dim transpose) is not reliably lowerable.
    y = jnp.transpose(y_ph, (0, 2, 3, 1)).reshape(B, C_out, L_out)
    counts = (s * jnp.clip(L_in - jnp.arange(n_m, dtype=jnp.int32) * Lm, 0, Lm)
              ).astype(jnp.float32)
    return y, stats, counts


def conv_transpose1d_fallback(x, w_t, b, *, stride, padding, out_dtype):
    """Generic ConvTranspose1d (zero-insertion) for configs the polyphase path
    does not cover (kernel_size != stride).  Not hit with the module defaults."""
    B, C_in, L = x.shape
    C_out, K = w_t.shape[1], w_t.shape[2]
    L_up = (L - 1) * stride + 1
    x_up = jnp.zeros((B, C_in, L_up), x.dtype).at[:, :, ::stride].set(x)
    w_conv = jnp.transpose(jnp.flip(w_t, axis=2), (1, 0, 2))  # [C_out, C_in, K]
    return conv1d_tiled(x_up, w_conv, b, dilation=1, padding=K - 1 - padding,
                        out_dtype=out_dtype)


def bn_act_cond(y, pre, cond, wc, bc, *, out_dtype, max_tile=CONV_MAX_TILE,
                slope=LEAKY_SLOPE):
    """x = leaky(scale*y + shift) [+ conv1x1(cond)], fused in one pass."""
    B, C, L = y.shape
    Lt = _pick_tile(L, max_tile)
    n_l = pl.cdiv(L, Lt)
    has_pre = pre is not None
    has_cond = cond is not None
    kernel = functools.partial(_bn_act_cond_kernel, has_pre=has_pre,
                               has_cond=has_cond, slope=slope)
    in_specs = [pl.BlockSpec((None, C, Lt), lambda l, b: (b, 0, l))]
    args = [y]
    if has_pre:
        in_specs += [pl.BlockSpec((C, 1), lambda l, b: (0, 0)),
                     pl.BlockSpec((C, 1), lambda l, b: (0, 0))]
        args += [pre[0].reshape(C, 1).astype(jnp.float32),
                 pre[1].reshape(C, 1).astype(jnp.float32)]
    if has_cond:
        Cc = cond.shape[1]
        in_specs += [pl.BlockSpec((None, Cc, Lt), lambda l, b: (b, 0, l)),
                     pl.BlockSpec((C, Cc), lambda l, b: (0, 0)),
                     pl.BlockSpec((C, 1), lambda l, b: (0, 0))]
        args += [cond, wc[:, :, 0].astype(jnp.bfloat16),
                 bc.reshape(C, 1).astype(jnp.float32)]
    return pl.pallas_call(
        kernel,
        out_shape=jax.ShapeDtypeStruct((B, C, L), out_dtype),
        grid=(n_l, B),
        in_specs=in_specs,
        out_specs=pl.BlockSpec((None, C, Lt), lambda l, b: (b, 0, l)),
        compiler_params=_cparams(),
    )(*args)


def resblock_fused(x, rb, *, out_dtype, max_tile=CONV_MAX_TILE, slope=LEAKY_SLOPE):
    B, C, L = x.shape
    K = rb["w1"].shape[2]
    d = rb["d"]
    Lt = _pick_tile(L, max_tile)
    assert 2 * d * (K - 1) <= 128
    n_l = pl.cdiv(L, Lt)
    w1 = jnp.transpose(rb["w1"], (0, 2, 1)).reshape(C, K * C).astype(jnp.bfloat16)
    w2 = jnp.transpose(rb["w2"], (0, 2, 1)).reshape(C, K * C).astype(jnp.bfloat16)
    wg = rb["wg"][:, :, 0].astype(jnp.bfloat16)
    kernel = functools.partial(_resblock_kernel, K=K, d=d, Lt=Lt, L=L, slope=slope)
    return pl.pallas_call(
        kernel,
        out_shape=jax.ShapeDtypeStruct((B, C, L), out_dtype),
        grid=(n_l, B),
        in_specs=_halo_specs(C, Lt, L) + [
            pl.BlockSpec((C, K * C), lambda l, b: (0, 0)),
            pl.BlockSpec((C, 1), lambda l, b: (0, 0)),
            pl.BlockSpec((C, K * C), lambda l, b: (0, 0)),
            pl.BlockSpec((C, 1), lambda l, b: (0, 0)),
            pl.BlockSpec((C, C), lambda l, b: (0, 0)),
            pl.BlockSpec((C, 1), lambda l, b: (0, 0)),
        ],
        out_specs=pl.BlockSpec((None, C, Lt), lambda l, b: (b, 0, l)),
        compiler_params=_cparams(),
    )(x, x, x,
      w1, rb["b1"].reshape(C, 1).astype(jnp.float32),
      w2, rb["b2"].reshape(C, 1).astype(jnp.float32),
      wg, rb["bg"].reshape(C, 1).astype(jnp.float32))


def final_layers_fused(x, w1, b1, w2, b2, *, max_tile=CONV_MAX_TILE,
                       slope=LEAKY_SLOPE):
    B, C, L = x.shape
    K = w1.shape[2]
    Lt = _pick_tile(L, max_tile)
    n_l = pl.cdiv(L, Lt)
    w1m = jnp.transpose(w1, (0, 2, 1)).reshape(C, K * C).astype(jnp.bfloat16)
    w2m = jnp.transpose(w2, (0, 2, 1)).reshape(1, K * C).astype(jnp.bfloat16)
    kernel = functools.partial(_final_kernel, K=K, Lt=Lt, L=L, slope=slope)
    return pl.pallas_call(
        kernel,
        out_shape=jax.ShapeDtypeStruct((B, 1, L), jnp.float32),
        grid=(n_l, B),
        in_specs=_halo_specs(C, Lt, L) + [
            pl.BlockSpec((C, K * C), lambda l, b: (0, 0)),
            pl.BlockSpec((C, 1), lambda l, b: (0, 0)),
            pl.BlockSpec((1, K * C), lambda l, b: (0, 0)),
            pl.BlockSpec((1, 1), lambda l, b: (0, 0)),
        ],
        out_specs=pl.BlockSpec((None, 1, Lt), lambda l, b: (b, 0, l)),
        compiler_params=_cparams(),
    )(x, x, x, w1m, b1.reshape(C, 1).astype(jnp.float32),
      w2m, b2.reshape(1, 1).astype(jnp.float32))


# --------------------------------------------------------------------------- #
# JAX glue
# --------------------------------------------------------------------------- #

def _bn_affine_from_stats(stats, counts, eps=BN_EPS):
    """stats: [B, n_tiles, C, 2] partial (sum, sumsq); counts: [n_tiles]
    per-tile element counts.  Returns per-channel (scale, shift) such that
    BN(x) == scale*x + shift (train-mode batch stats, affine weight=1, bias=0).
    Uses a Chan-style centered merge across tiles to avoid catastrophic
    cancellation of E[x^2]-E[x]^2 on long audio.
    TODO(synk): running-stat buffer updates (training bookkeeping) not mirrored."""
    n_t = counts[None, :, None]                       # [1, n_m, 1]
    s1 = stats[..., 0]                                # [B, n_m, C]
    s2 = stats[..., 1]
    mean_t = s1 / jnp.maximum(n_t, 1.0)
    m2_t = jnp.maximum(s2 - mean_t * s1, 0.0)         # within-tile centered SS
    N = stats.shape[0] * jnp.sum(counts)
    mean = jnp.sum(s1, axis=(0, 1)) / N               # [C]
    m2 = jnp.sum(m2_t + n_t * jnp.square(mean_t - mean[None, None, :]),
                 axis=(0, 1))
    var = m2 / N
    scale = jax.lax.rsqrt(var + eps)
    shift = -mean * scale
    return scale.astype(jnp.float32), shift.astype(jnp.float32)


def nearest_interp(x, L_out):
    # Integer index math (exact), matching F.interpolate(mode='nearest').
    L_in = x.shape[2]
    idx = (jnp.arange(L_out, dtype=jnp.int32) * L_in) // L_out
    return x[:, :, idx]


# --------------------------------------------------------------------------- #
# Parameter initialization (mirrors the torch module's _init_weights)
# --------------------------------------------------------------------------- #

def _kaiming_normal(key, shape, fan_in, a=0.01):
    gain = math.sqrt(2.0 / (1.0 + a * a))
    return jax.random.normal(key, shape, jnp.float32) * (gain / math.sqrt(fan_in))


def init_vocoder_params(key, hidden_channels, in_channels, conditioning_channels,
                        upsample_factors, n_residual_layers=4, dilation_cycle=4,
                        kernel_size=3):
    keys = iter(jax.random.split(key, 64))
    params = {}
    params["init_w"] = _kaiming_normal(next(keys), (hidden_channels, in_channels, 7),
                                       in_channels * 7)
    params["init_b"] = jnp.zeros((hidden_channels,), jnp.float32)

    ups = []
    cur = hidden_channels
    for f in upsample_factors:
        out = cur // 2
        K = 8
        ups.append({
            "w": _kaiming_normal(next(keys), (cur, out, K), out * K),  # [in, out, K]
            "b": jnp.zeros((out,), jnp.float32),
            "stride": f,
            "pad": (K - f) // 2,
        })
        cur = out
    params["ups"] = ups

    res = []
    for i in range(n_residual_layers):
        d = 2 ** (i % dilation_cycle)
        res.append({
            "d": d,
            "w1": _kaiming_normal(next(keys), (cur, cur, kernel_size), cur * kernel_size),
            "b1": jnp.zeros((cur,), jnp.float32),
            "w2": _kaiming_normal(next(keys), (cur, cur, kernel_size), cur * kernel_size),
            "b2": jnp.zeros((cur,), jnp.float32),
            "wg": _kaiming_normal(next(keys), (cur, cur, 1), cur),
            "bg": jnp.zeros((cur,), jnp.float32),
        })
    params["res"] = res

    params["cond_w"] = _kaiming_normal(next(keys), (cur, conditioning_channels, 1),
                                       conditioning_channels)
    params["cond_b"] = jnp.zeros((cur,), jnp.float32)
    params["fin_w1"] = _kaiming_normal(next(keys), (cur, cur, 3), cur * 3)
    params["fin_b1"] = jnp.zeros((cur,), jnp.float32)
    params["fin_w2"] = _kaiming_normal(next(keys), (1, cur, 3), cur * 3)
    params["fin_b2"] = jnp.zeros((1,), jnp.float32)
    return params


# --------------------------------------------------------------------------- #
# Forward pass
# --------------------------------------------------------------------------- #

def vocoder_forward(params, mel_spec, condition=None, *,
                    act_dtype=jnp.bfloat16, slope=LEAKY_SLOPE):
    """mel_spec: [B, n_mels, T_mel]; condition: optional [B, C_cond, T_cond].
    Returns waveform [B, T_audio] (float32)."""
    # TODO(synk): torch.isnan/isinf host-side debug prints omitted.
    if mel_spec.ndim == 4:
        mel_spec = jnp.squeeze(mel_spec, axis=1)

    # Initial Conv1d(K=7, padding=3), bf16 activations out.
    x = conv1d_tiled(mel_spec.astype(act_dtype), params["init_w"], params["init_b"],
                     dilation=1, padding=3, out_dtype=act_dtype)

    pre = None  # pending (scale, shift) of the previous BatchNorm (+ leaky) to fold
    for up in params["ups"]:
        s = up["stride"]
        K = up["w"].shape[2]
        p = up["pad"]
        if K == s and p == 0:
            y, stats, counts = upsample_poly(
                x, up["w"], up["b"], stride=s,
                pre_scale=pre[0] if pre is not None else None,
                pre_shift=pre[1] if pre is not None else None,
                out_dtype=act_dtype, slope=slope)
            pre = _bn_affine_from_stats(stats, counts)
            x = y
        else:
            # TODO(synk): polyphase path covers kernel_size == stride, padding == 0
            # (the module default); other strides fall back to zero-insertion.
            if pre is not None:
                x = _leaky(x.astype(jnp.float32) * pre[0][None, :, None]
                           + pre[1][None, :, None], slope).astype(act_dtype)
            y = conv_transpose1d_fallback(x, up["w"], up["b"], stride=s, padding=p,
                                          out_dtype=act_dtype)
            yf = y.astype(jnp.float32)
            mean = jnp.mean(yf, axis=(0, 2), keepdims=True)
            var = jnp.mean((yf - mean) ** 2, axis=(0, 2), keepdims=True)
            x = _leaky((yf - mean) * jax.lax.rsqrt(var + BN_EPS), slope).astype(act_dtype)
            pre = None

    # Fold the last BatchNorm + LeakyReLU, plus the 1x1 conditioning conv, into
    # one fused kernel that materializes the residual-stack input.
    L = x.shape[2]
    cond_arr = None
    if condition is not None:
        if condition.shape[2] != L:
            condition = nearest_interp(condition, L)
        cond_arr = condition.astype(act_dtype)
    if pre is not None or cond_arr is not None:
        x = bn_act_cond(x, pre, cond_arr, params["cond_w"], params["cond_b"],
                        out_dtype=act_dtype, slope=slope)

    # Fused residual blocks.
    for rb in params["res"]:
        x = resblock_fused(x, rb, out_dtype=act_dtype, slope=slope)

    # Fused final head -> [B, 1, L] float32 -> squeeze.
    wave = final_layers_fused(x, params["fin_w1"], params["fin_b1"],
                              params["fin_w2"], params["fin_b2"], slope=slope)
    return wave[:, 0, :]


# --------------------------------------------------------------------------- #
# main
# --------------------------------------------------------------------------- #

if __name__ == "__main__":
    key = jax.random.PRNGKey(0)
    k_param, k_mel, k_cond = jax.random.split(key, 3)

    B, n_mels, T_mel = 2, 10, 8
    hidden_channels = 32
    cond_channels = 6
    upsample_factors = [8, 8, 8]

    params = init_vocoder_params(
        k_param, hidden_channels, n_mels, cond_channels, upsample_factors)

    mel = jax.random.normal(k_mel, (B, n_mels, T_mel), jnp.float32)
    condition = jax.random.normal(k_cond, (B, cond_channels, 100), jnp.float32)

    waveform = vocoder_forward(params, mel, condition)
    waveform = jax.block_until_ready(waveform)

    expected_T = T_mel
    for f in upsample_factors:
        expected_T *= f
    assert waveform.shape == (B, expected_T), waveform.shape
    assert waveform.dtype == jnp.float32
    assert bool(jnp.all(jnp.isfinite(waveform)))
    assert bool(jnp.all(jnp.abs(waveform) <= 1.0))  # tanh-bounded output

    print("KERNEL_OK")
</pallas_src>

<mosaic_0001>
module attributes {stable_mosaic.version = 11 : i64} {
  func.func @_conv_tiled_kernel(%arg0: i32, %arg1: i32, %arg2: memref<1x10x128xbf16, #tpu.memory_space<vmem>>, %arg3: memref<1x10x128xbf16, #tpu.memory_space<vmem>>, %arg4: memref<1x10x128xbf16, #tpu.memory_space<vmem>>, %arg5: memref<32x70xbf16, #tpu.memory_space<vmem>>, %arg6: memref<32x1xf32, #tpu.memory_space<vmem>>, %arg7: memref<1x32x128xbf16, #tpu.memory_space<vmem>>) attributes {dimension_semantics = [#tpu.dimension_semantics<parallel>, #tpu.dimension_semantics<parallel>], iteration_bounds = array<i64: 1, 2>, scalar_prefetch = 0 : i64, scratch_operands = 0 : i64, tpu.core_type = #tpu.core_type<tc>, window_params = [{transform_indices = @transform_0, window_bounds = array<i64: 1, 10, 128>}, {transform_indices = @transform_1, window_bounds = array<i64: 1, 10, 128>}, {transform_indices = @transform_2, window_bounds = array<i64: 1, 10, 128>}, {pipeline_mode = #tpu.pipeline_mode<synchronous>, transform_indices = @transform_3, window_bounds = array<i64: 32, 70>}, {pipeline_mode = #tpu.pipeline_mode<synchronous>, transform_indices = @transform_4, window_bounds = array<i64: 32, 1>}, {transform_indices = @transform_5, window_bounds = array<i64: 1, 32, 128>}]} {
    %c0 = arith.constant 0 : index
    %c0_0 = arith.constant 0 : index
    %c0_1 = arith.constant 0 : index
    %0 = vector.load %arg2[%c0, %c0_0, %c0_1] : memref<1x10x128xbf16, #tpu.memory_space<vmem>>, vector<1x10x128xbf16>
    %1 = vector.shape_cast %0 : vector<1x10x128xbf16> to vector<10x128xbf16>
    %c0_2 = arith.constant 0 : index
    %c0_3 = arith.constant 0 : index
    %c0_4 = arith.constant 0 : index
    %2 = vector.load %arg3[%c0_2, %c0_3, %c0_4] : memref<1x10x128xbf16, #tpu.memory_space<vmem>>, vector<1x10x128xbf16>
    %3 = vector.shape_cast %2 : vector<1x10x128xbf16> to vector<10x128xbf16>
    %c0_5 = arith.constant 0 : index
    %c0_6 = arith.constant 0 : index
    %c0_7 = arith.constant 0 : index
    %4 = vector.load %arg4[%c0_5, %c0_6, %c0_7] : memref<1x10x128xbf16, #tpu.memory_space<vmem>>, vector<1x10x128xbf16>
    %5 = vector.shape_cast %4 : vector<1x10x128xbf16> to vector<10x128xbf16>
    %6 = tpu.concatenate %1, %3, %5 in 1 : vector<10x128xbf16>, vector<10x128xbf16>, vector<10x128xbf16> -> vector<10x384xbf16>
    %7 = tpu.iota {dimensions = array<i32: 1>} : vector<1x384xi32>
    %c128_i32 = arith.constant 128 : i32
    %8 = arith.muli %arg0, %c128_i32 : i32
    %c128_i32_8 = arith.constant 128 : i32
    %9 = arith.subi %8, %c128_i32_8 : i32
    %10 = vector.broadcast %9 : i32 to vector<1x384xi32>
    %11 = arith.addi %7, %10 : vector<1x384xi32>
    %c0_i32 = arith.constant 0 : i32
    %12 = vector.broadcast %c0_i32 : i32 to vector<1x384xi32>
    %13 = arith.cmpi sge, %11, %12 : vector<1x384xi32>
    %c8_i32 = arith.constant 8 : i32
    %14 = vector.broadcast %c8_i32 : i32 to vector<1x384xi32>
    %15 = arith.cmpi slt, %11, %14 : vector<1x384xi32>
    %16 = arith.andi %13, %15 : vector<1x384xi1>
    %cst = arith.constant 0.000000e+00 : f32
    %17 = arith.truncf %cst : f32 to bf16
    %18 = vector.shape_cast %16 : vector<1x384xi1> to vector<1x384xi1>
    %19 = vector.broadcast %18 : vector<1x384xi1> to vector<10x384xi1>
    %20 = vector.broadcast %17 : bf16 to vector<10x384xbf16>
    %21 = arith.select %19, %6, %20 : vector<10x384xi1>, vector<10x384xbf16>
    %22 = vector.extract_strided_slice %21 {offsets = [0, 125], sizes = [10, 128], strides = [1, 1]} : vector<10x384xbf16> to vector<10x128xbf16>
    %23 = vector.extract_strided_slice %21 {offsets = [0, 126], sizes = [10, 128], strides = [1, 1]} : vector<10x384xbf16> to vector<10x128xbf16>
    %24 = vector.extract_strided_slice %21 {offsets = [0, 127], sizes = [10, 128], strides = [1, 1]} : vector<10x384xbf16> to vector<10x128xbf16>
    %25 = vector.extract_strided_slice %21 {offsets = [0, 128], sizes = [10, 128], strides = [1, 1]} : vector<10x384xbf16> to vector<10x128xbf16>
    %26 = vector.extract_strided_slice %21 {offsets = [0, 129], sizes = [10, 128], strides = [1, 1]} : vector<10x384xbf16> to vector<10x128xbf16>
    %27 = vector.extract_strided_slice %21 {offsets = [0, 130], sizes = [10, 128], strides = [1, 1]} : vector<10x384xbf16> to vector<10x128xbf16>
    %28 = vector.extract_strided_slice %21 {offsets = [0, 131], sizes = [10, 128], strides = [1, 1]} : vector<10x384xbf16> to vector<10x128xbf16>
    %29 = tpu.concatenate %22, %23, %24, %25, %26, %27, %28 in 0 : vector<10x128xbf16>, vector<10x128xbf16>, vector<10x128xbf16>, vector<10x128xbf16>, vector<10x128xbf16>, vector<10x128xbf16>, vector<10x128xbf16> -> vector<70x128xbf16>
    %c0_9 = arith.constant 0 : index
    %c0_10 = arith.constant 0 : index
    %30 = vector.load %arg5[%c0_9, %c0_10] : memref<32x70xbf16, #tpu.memory_space<vmem>>, vector<32x70xbf16>
    %cst_11 = arith.constant dense<0.000000e+00> : vector<32x128xf32>
    %31 = tpu.matmul %30, %29, %cst_11 {dimension_numbers = #tpu.dot_dimension_numbers<[1], [0], [0], [1], [0, 0, 1, 1], [], []>} : vector<32x70xbf16>, vector<70x128xbf16>, vector<32x128xf32> -> vector<32x128xf32>
    %c0_12 = arith.constant 0 : index
    %c0_13 = arith.constant 0 : index
    %32 = vector.load %arg6[%c0_12, %c0_13] : memref<32x1xf32, #tpu.memory_space<vmem>>, vector<32x1xf32>
    %33 = vector.broadcast %32 : vector<32x1xf32> to vector<32x128xf32>
    %34 = arith.addf %31, %33 : vector<32x128xf32>
    %35 = arith.truncf %34 : vector<32x128xf32> to vector<32x128xbf16>
    %c0_14 = arith.constant 0 : index
    %c0_15 = arith.constant 0 : index
    %c0_16 = arith.constant 0 : index
    %36 = vector.load %arg7[%c0_14, %c0_15, %c0_16] : memref<1x32x128xbf16, #tpu.memory_space<vmem>>, vector<1x32x128xbf16>
    %37 = vector.shape_cast %36 : vector<1x32x128xbf16> to vector<32x128xbf16>
    %38 = vector.shape_cast %35 : vector<32x128xbf16> to vector<1x32x128xbf16>
    tpu.vector_store %arg7[%c0_14, %c0_15, %c0_16], %38 {strides = array<i32>} : memref<1x32x128xbf16, #tpu.memory_space<vmem>>, vector<1x32x128xbf16>,
    return
  }
  func.func @transform_0(%arg0: i32, %arg1: i32) -> (i32, i32, i32) {
    %c1_i32 = arith.constant 1 : i32
    %0 = arith.muli %arg0, %c1_i32 : i32
    %c1_i32_0 = arith.constant 1 : i32
    %1 = arith.subi %0, %c1_i32_0 : i32
    %c0_i32 = arith.constant 0 : i32
    %2 = arith.maxsi %1, %c0_i32 : i32
    %c0_i32_1 = arith.constant 0 : i32
    %c0_i32_2 = arith.constant 0 : i32
    return %arg1, %c0_i32_1, %2 : i32, i32, i32
  }
  func.func @transform_1(%arg0: i32, %arg1: i32) -> (i32, i32, i32) {
    %c0_i32 = arith.constant 0 : i32
    %0 = arith.minsi %arg0, %c0_i32 : i32
    %c0_i32_0 = arith.constant 0 : i32
    %c0_i32_1 = arith.constant 0 : i32
    return %arg1, %c0_i32_0, %0 : i32, i32, i32
  }
  func.func @transform_2(%arg0: i32, %arg1: i32) -> (i32, i32, i32) {
    %c1_i32 = arith.constant 1 : i32
    %0 = arith.addi %arg0, %c1_i32 : i32
    %c1_i32_0 = arith.constant 1 : i32
    %1 = arith.muli %0, %c1_i32_0 : i32
    %c0_i32 = arith.constant 0 : i32
    %2 = arith.minsi %1, %c0_i32 : i32
    %c0_i32_1 = arith.constant 0 : i32
    %c0_i32_2 = arith.constant 0 : i32
    return %arg1, %c0_i32_1, %2 : i32, i32, i32
  }
  func.func @transform_3(%arg0: i32, %arg1: i32) -> (i32, i32) {
    %c0_i32 = arith.constant 0 : i32
    %c0_i32_0 = arith.constant 0 : i32
    %c0_i32_1 = arith.constant 0 : i32
    return %c0_i32, %c0_i32_0 : i32, i32
  }
  func.func @transform_4(%arg0: i32, %arg1: i32) -> (i32, i32) {
    %c0_i32 = arith.constant 0 : i32
    %c0_i32_0 = arith.constant 0 : i32
    %c0_i32_1 = arith.constant 0 : i32
    return %c0_i32, %c0_i32_0 : i32, i32
  }
  func.func @transform_5(%arg0: i32, %arg1: i32) -> (i32, i32, i32) {
    %c0_i32 = arith.constant 0 : i32
    %c0_i32_0 = arith.constant 0 : i32
    return %arg1, %c0_i32, %arg0 : i32, i32, i32
  }
}

</mosaic_0001>

<bundles_post_ra>
// kernel: tpu_custom_call.1
= control target key start
LH: loop header
LB: loop body
LE: loop exit
PB: predicated region body
PF: predicated region fallthrough
CT: control target
= control target key end

     0   :  { %s970_s18 = smov 0   ;;  %s972_s19 = smov 0   ;;  %s1051_s0 = inlined_call_operand.vmem [shape: bf16[2,10,8], index: 0, kind: input, shape index: {}]   ;;  %s1052_s1 = inlined_call_operand.vmem [shape: bf16[2,10,8], index: 1, kind: input, shape index: {}]   ;;  %s1053_s2 = inlined_call_operand.vmem [shape: bf16[2,10,8], index: 2, kind: input, shape index: {}]   ;;  %s1054_s3 = inlined_call_operand.vmem [shape: bf16[32,70], index: 3, kind: input, shape index: {}]   ;;  %s1055_s4 = inlined_call_operand.vmem [shape: f32[32,1], index: 4, kind: input, shape index: {}]   ;;  %s1056_s5 = inlined_call_operand.vmem [shape: bf16[2,32,8], index: 5, kind: output, shape index: {}]  }
   0x1   :  { %s974_s20 = smov 0  }
   0x2 LB: > { %s24_s21 = sadd.s32 1, %s925_s19  ;;  %p804_p0 = scmp.ge.s32.totalorder %s929_s20, 1  ;;  %s929_s20 = sphi %s974_s20, %s15_s20   ;;  %s925_s19 = sphi %s972_s19, %s1058_s19   ;;  %s921_s18 = sphi %s970_s18, %s1057_s18  }
   0x3   : > { %p25_p1 = scmp.ge.s32.totalorder %s24_s21, 2  ;;  %p268_p2 = scmp.lt.s32.totalorder %s929_s20, 3 }
   0x5   : > { %s1060_s21 = smov (%p25_p1, %s24_s21), 0  ;;  %p269_p3 = pnand %p804_p0, %p268_p2 }
   0x6   : > { %p329_p4 = scmp.lt.s32.totalorder (!%p269_p3), %s921_s18, 1  ;;  %v401_v0 = vlaneseq (!%p269_p3)  ;;  %vm931_vm0 = vmmov (!%p269_p3), 0   ;;  %v932_v1 = vmov (!%p269_p3), 0   ;;  %s933_s7 = smov (!%p269_p3), 124   ;;  %vm464_vm7 = vcmask (!%p269_p3), 1031168   ;;  %v905_v48 = vld [vmem:[%s1054_s3] sm:$0xff] (!%p269_p3)  }
   0x7   : > { %272 = sbr.rel (%p269_p3) target bundleno = 502 (0x1f6), region = 40  ;;  %vm427_vm1 = vmpackc.low (!%p269_p3), %vm931_vm0, %vm931_vm0  ;;  %900 = vset.pattern.permute.xlu1 (!%p269_p3), %v932_v1  ;;  %901 = vset.pattern.permute.xlu0 (!%p269_p3), %v932_v1  ;;  %s934_s8 = smov (!%p269_p3), 126   ;;  %vm456_vm8 = vcmask (!%p269_p3), 1039360   ;;  %vm494_vm9 = vcmask (!%p269_p3), 1044480   ;;  %vm501_vm10 = vcmask (!%p269_p3), 1041408   ;;  %vm506_vm11 = vcmask (!%p269_p3), 1046528  }
   0x8   : > { %v431_v2 = vshrl.u32 (!%p269_p3), %v401_v0, 7  ;;  %v402_v3 = vand.u32 (!%p269_p3), 127, %v401_v0  ;;  %v429_v4 = vsel (!%p269_p3), %vm427_vm1, 65537, %v932_v1  ;;  %s935_s9 = smov (!%p269_p3), 127   ;;  %s936_s10 = smov (!%p269_p3), 125   ;;  %vm476_vm12 = vcmask (!%p269_p3), 1014784  }
   0x9   : > { %s937_s11 = smov (!%p269_p3), 123   ;;  %s938_s12 = smov (!%p269_p3), 122   ;;  %vm510_vm13 = vcmask (!%p269_p3), 1043456   ;;  %vm484_vm14 = vcmask (!%p269_p3), 1006592   ;;  %vm601_vm15 = vcmask (!%p269_p3), 572416   ;;  %vm492_vm1 = vcmask (!%p269_p3), 998400  }
   0xa   : > { %v432_v5 = vsub.s32 (!%p269_p3), 0, %v431_v2  ;;  %v403_v6 = vadd.s32 (!%p269_p3), 128, %v402_v3  ;;  %v436_v11 = vsub.s32 (!%p269_p3), 4, %v431_v2  ;;  %s939_s13 = smov (!%p269_p3), 3   ;;  %862 = vmatprep.mubr.msk.bf16.mxu0 (!%p269_p3), %vm601_vm15, %v905_v48  ;;  %v529_v59 = vld [vmem:[%s1055_s4] sm:$0xff] (!%p269_p3)  ;;  %v530_v60 = vld [vmem:[%s1055_s4 + $0x8] sm:$0xff] (!%p269_p3) }
   0xb   : > { %v531_v61 = vld [vmem:[%s1055_s4 + $0x10] sm:$0xff] (!%p269_p3)  ;;  %v532_v62 = vld [vmem:[%s1055_s4 + $0x18] sm:$0xff] (!%p269_p3) }
   0xc   : > { %v441_v8 = vrot.slane (!%p269_p3), %v429_v4, %v432_v5  ;;  %v409_v9 = vadd.s32 (!%p269_p3), 4294967168, %v403_v6 }
   0xe   : > { %s1062_s18 = smov (!%p329_p4, %s921_s18), 1  ;;  %vm444_vm2 = vcmp.ne.s16.totalorder %v441_v8, 0  ;;  %vm415_vm3 = vcmp.lt.s32.totalorder %v409_v9, 8 }
   0xf   : > { %s826_s22 = sshll.u32 %s1062_s18, 3  ;;  %vm426_vm4 = vmpackc.low %vm415_vm3, %vm931_vm0  ;;  %vm515_vm0 = vcmask 1040384   ;;  %vm591_vm3 = vcmask 23552   ;;  %s829_s30 = sshll.u32 %s1062_s18, 4 }
  0x10   : > { %s362_s25 = scalar_lea.vmem %s1053_s2, %s826_s22  ;;  %s349_s28 = scalar_lea.vmem %s1052_s1, %s826_s22  ;;  %v428_v15 = vsel %vm426_vm4, 65537, %v932_v1  ;;  %vm608_vm4 = vcmask 1042432  }
  0x11   : > { %v902_v7 = vld [vmem:[%s362_s25] sm:$0x1f]   ;;  %s336_s6 = scalar_lea.vmem %s1051_s0, %s826_s22  ;;  %v433_v16 = vrot.slane %v428_v15, %v432_v5  ;;  %v437_v17 = vrot.slane %v428_v15, %v436_v11  ;;  %v906_v15 = vld [vmem:[%s1054_s3 + $0x8] sm:$0xff]  }
  0x12   : > { %v447_v10 = vsel %vm444_vm2, %v902_v7, 0  ;;  %v903_v13 = vld [vmem:[%s336_s6] sm:$0x1f]   ;;  %vm520_vm2 = vcmask 1045504  }
  0x13   : > { %v471_v12 = vrot.slane %v447_v10, 4  ;;  %v904_v14 = vld [vmem:[%s349_s28] sm:$0x1f]   ;;  %vm442_vm5 = vcmp.ne.s16.totalorder %v433_v16, 0  ;;  %vm443_vm6 = vcmp.ne.s16.totalorder %v437_v17, 0  ;;  %v479_v27 = vrot.slane %v447_v10, 7 }
  0x14   : > { %v445_v18 = vsel %vm442_vm5, %v903_v13, 0  ;;  %v446_v19 = vsel %vm443_vm6, %v904_v14, 0  ;;  %v487_v29 = vrot.slane %v447_v10, 2 }
  0x15   : > { %474 = vrot.lane.b32.xlu0 %v471_v12, %s933_s7  ;;  %v458_v20 = vrot.slane %v445_v18, 6  ;;  %v450_v21 = vrot.slane %v445_v18, 3  ;;  %v459_v22 = vrot.slane %v446_v19, 6  ;;  %v451_v23 = vrot.slane %v446_v19, 3 }
  0x16   : > { %v470_v24 = vrot.slane %v446_v19, 4  ;;  %v466_v25 = vrot.slane %v446_v19, 1  ;;  %v478_v26 = vrot.slane %v446_v19, 7  ;;  %v486_v28 = vrot.slane %v446_v19, 2 }
  0x17   : > { %460 = vrot.lane.b32.xlu1 %v458_v20, %s934_s8 }
  0x19   : > { %452 = vrot.lane.b32.xlu0 %v450_v21, %s935_s9 }
  0x1b   : > { %462 = vrot.lane.b32.xlu1 %v459_v22, %s934_s8  ;;  %s373_s8 = scalar_lea.vmem %s1056_s5, %s829_s30 }
  0x1d   : > { %454 = vrot.lane.b32.xlu0 %v451_v23, %s935_s9 }
  0x1f   : > { %472 = vrot.lane.b32.xlu1 %v470_v24, %s933_s7 }
  0x21   : > { %467 = vrot.lane.b32.xlu0 %v466_v25, %s936_s10 }
  0x23   : > { %480 = vrot.lane.b32.xlu1 %v478_v26, %s937_s11 }
  0x25   : > { %482 = vrot.lane.b32.xlu0 %v479_v27, %s937_s11 }
  0x27   : > { %488 = vrot.lane.b32.xlu1 %v486_v28, %s938_s12 }
  0x29   : > { %490 = vrot.lane.b32.xlu0 %v487_v29, %s938_s12 }
  0x87   : > { %v475_v30 = vpop.permute.xlu0 %474 }
  0x89   : > { %v461_v31 = vpop.permute.xlu1 %460 }
  0x8b   : > { %v453_v32 = vpop.permute.xlu0 %452 }
  0x8d   : > { %v463_v33 = vpop.permute.xlu1 %462 }
  0x8e   : > { %v465_v35 = vsel %vm464_vm7, %v461_v31, %v463_v33 }
  0x8f   : > { %v455_v34 = vpop.permute.xlu0 %454 }
  0x90   : > { %v457_v36 = vsel %vm456_vm8, %v453_v32, %v455_v34  ;;  %v500_v37 = vsel %vm494_vm9, %v446_v19, %v455_v34  ;;  %v505_v39 = vsel %vm501_vm10, %v455_v34, %v463_v33 }
  0x91   : > { %573 = vrot.lane.b32.xlu0 %v500_v37, %s939_s13  ;;  %v497_v38 = vsel %vm494_vm9, %v445_v18, %v457_v36  ;;  %v473_v40 = vpop.permute.xlu1 %472  ;;  %v503_v42 = vsel %vm501_vm10, %v457_v36, %v465_v35 }
  0x92   : > { %571 = vrot.lane.b32.xlu1 %v497_v38, %s939_s13  ;;  %v477_v45 = vsel %vm476_vm12, %v473_v40, %v475_v30 }
  0x93   : > { %v468_v41 = vpop.permute.xlu0 %467 }
  0x94   : > { %v509_v43 = vsel %vm506_vm11, %v505_v39, %v468_v41  ;;  %v508_v44 = vsel %vm506_vm11, %v503_v42, %v468_v41  ;;  %v514_v49 = vsel %vm510_vm13, %v468_v41, %v477_v45  ;;  %v512_v51 = vsel %vm510_vm13, %v468_v41, %v473_v40 }
  0x95   : > { %577 = vrot.lane.b32.xlu0 %v509_v43, %s939_s13  ;;  %v481_v46 = vpop.permute.xlu1 %480 }
  0x96   : > { %575 = vrot.lane.b32.xlu1 %v508_v44, %s939_s13  ;;  %v517_v52 = vsel %vm515_vm0, %v473_v40, %v481_v46 }
  0x97   : > { %v483_v47 = vpop.permute.xlu0 %482 }
  0x98   : > { %v485_v50 = vsel %vm484_vm14, %v481_v46, %v483_v47 }
  0x99   : > { %581 = vrot.lane.b32.xlu0 %v514_v49, %s939_s13  ;;  %v489_v53 = vpop.permute.xlu1 %488  ;;  %v519_v57 = vsel %vm515_vm0, %v477_v45, %v485_v50 }
  0x9a   : > { %579 = vrot.lane.b32.xlu1 %v512_v51, %s939_s13  ;;  %v522_v56 = vsel %vm520_vm2, %v517_v52, %v489_v53 }
  0x9b   : > { %v491_v54 = vpop.permute.xlu0 %490 }
  0x9c   : > { %v493_v55 = vsel %vm492_vm1, %v489_v53, %v491_v54 }
  0x9d   : > { %v524_v58 = vsel %vm520_vm2, %v519_v57, %v493_v55 }
  0x9e   : > { %583 = vrot.lane.b32.xlu1 %v522_v56, %s939_s13  ;;  %585 = vrot.lane.b32.xlu0 %v524_v58, %s939_s13 }
  0xa2   : > { %587 = vrot.lane.b32.xlu1 %v489_v53, %s939_s13  ;;  %589 = vrot.lane.b32.xlu0 %v493_v55, %s939_s13 }
  0xa6   : > { %535 = vperm.xlu1 %900, %v529_v59   ;;  %540 = vperm.xlu0 %901, %v530_v60  }
  0xaa   : > { %545 = vperm.xlu1 %900, %v531_v61  }
  0xae   : > { %550 = vperm.xlu1 %900, %v532_v62  }
 0x103   : > { %v574_v63 = vpop.permute.xlu0 %573 }
 0x104   : > { %v572_v0 = vpop.permute.xlu1 %571 }
 0x105   : > { %v592_v1 = vsel %vm591_vm3, %v572_v0, %v574_v63 }
 0x106   : > { %852 = vmatprep.subr.bf16.mxu0 %v592_v1 }
 0x107   : > { %853 = vmatpush3.bf16.msra.mxu0 %v592_v1  ;;  %v578_v2 = vpop.permute.xlu0 %577 }
 0x108   : > { %v576_v3 = vpop.permute.xlu1 %575 }
 0x109   : > { %v593_v4 = vsel %vm591_vm3, %v576_v3, %v578_v2 }
 0x10a   : > { %854 = vmatprep.subr.bf16.mxu0 %v593_v4 }
 0x10b   : > { %855 = vmatpush3.bf16.msra.mxu0 %v593_v4  ;;  %v582_v5 = vpop.permute.xlu0 %581 }
 0x10c   : > { %v580_v6 = vpop.permute.xlu1 %579 }
 0x10d   : > { %v594_v7 = vsel %vm591_vm3, %v580_v6, %v582_v5 }
 0x10e   : > { %856 = vmatprep.subr.bf16.mxu0 %v594_v7 }
 0x10f   : > { %857 = vmatpush3.bf16.msra.mxu0 %v594_v7 }
 0x110   : > { %v584_v8 = vpop.permute.xlu1 %583  ;;  %v586_v9 = vpop.permute.xlu0 %585 }
 0x111   : > { %v595_v10 = vsel %vm591_vm3, %v584_v8, %v586_v9 }
 0x112   : > { %858 = vmatprep.subr.bf16.mxu0 %v595_v10 }
 0x113   : > { %859 = vmatpush3.bf16.msra.mxu0 %v595_v10 }
 0x114   : > { %v588_v11 = vpop.permute.xlu1 %587  ;;  %v590_v12 = vpop.permute.xlu0 %589 }
 0x115   : > { %v596_v13 = vsel %vm591_vm3, %v588_v11, %v590_v12 }
 0x116   : > { %866 = vmatprep.subr.msk.bf16.mxu0 %vm608_vm4, %v596_v13  ;;  %v610_v14 = vsel %vm608_vm4, %v596_v13, 0 }
 0x117   : > { %861 = vmatpush3.bf16.msra.mxu0 %v610_v14 }
 0x11a   : > { %863 = vmatmul.mubr.msk.bf16.vlgmr.msra.gmra.mrb[0].mxu0 %vm601_vm15, %v906_v15 }
 0x125   : > { %v536_v16 = vpop.permute.xlu1 %535  ;;  %v541_v20 = vpop.permute.xlu0 %540 }
 0x129   : > { %v546_v17 = vpop.permute.xlu1 %545 }
 0x12d   : > { %v551_v21 = vpop.permute.xlu1 %550 }
 0x1ed   : > { %v864_v18 = vpop.f32.mrb[0].mxu0 }
 0x1ee   : > { %v646_v19 = vpop.f32.mrb[1].mxu0  ;;  %v655_v23 = vadd.f32 %v864_v18, %v546_v17 }
 0x1ef   : > { %v865_v22 = vpop.f32.mrb[2].mxu0  ;;  %v647_v26 = vadd.f32 %v646_v19, %v536_v16 }
 0x1f0   : > { %v658_v24 = vadd.f32 %v865_v22, %v551_v21  ;;  %v649_v25 = vpop.f32.mrb[3].mxu0 }
 0x1f1   : > { %v650_v27 = vadd.f32 %v649_v25, %v541_v20 }
 0x1f2   : > { %v842_v28 = vpack.c.bf16 %v658_v24, %v655_v23 }
 0x1f3   : > { %v837_v29 = vpack.c.bf16 %v650_v27, %v647_v26 }
 0x1f4   : > { %844 = vst [vmem:[%s373_s8 + $0x8] sm:$0xff] %v842_v28  }
 0x1f5   : > { %838 = vst [vmem:[%s373_s8] sm:$0xff] %v837_v29  }
 0x1f6 PF: > { %s15_s20 = sadd.s32 1, %s929_s20   ;;  %s1057_s18 = smov %s925_s19 }
 0x1f7   : > { %p12_p5 = scmp.ge.s32.totalorder %s15_s20, 4   ;;  %s1058_s19 = smov %s1060_s21 }
 0x1f9   :  { %14 = sbr.rel (!%p12_p5) target bundleno = 2 (0x2), region = 76 }

</bundles_post_ra>
